<compile_context>
chip_gen: v7x
topology: tpu7x:2x2x1
jax: 0.10.0
libtpu: 0.0.40
codegen_flags: <defaults>
</compile_context>

<pallas_src>
import math

import jax
import jax.numpy as jnp
from jax.experimental import pallas as pl
from jax.experimental.pallas import tpu as pltpu

_NEG_INF = -1e30  # large finite negative: avoids inf-inf NaNs in masked softmax


# ----------------------------------------------------------------------------
# helpers
# ----------------------------------------------------------------------------
def _layer_norm_f32(x, w, b, eps):
    mu = jnp.mean(x, axis=-1, keepdims=True)
    var = jnp.mean((x - mu) ** 2, axis=-1, keepdims=True)
    return (x - mu) * jax.lax.rsqrt(var + eps) * w + b


def _pick_batch_block(n_batch, seq_len, target_rows):
    """Largest divisor of n_batch whose row count (block_b*L) stays near target_rows,
    while keeping the parallel grid length >= 2 whenever n_batch >= 2 (v7x 2 TCs)."""
    want = max(1, target_rows // max(seq_len, 1))
    if n_batch >= 2:
        want = min(want, n_batch // 2)
    want = max(want, 1)
    best = 1
    for d in range(1, n_batch + 1):
        if n_batch % d == 0 and d <= want:
            best = d
    return best


def _hw_config():
    """Per-generation VMEM limit (with headroom) and target rows per grid step."""
    cap = 64 * 1024 * 1024  # conservative fallback (v7x-sized)
    try:
        cap = int(pltpu.get_tpu_info().vmem_capacity_bytes)
    except Exception:
        pass
    vmem_limit = int(min(int(cap * 0.85), 100 * 1024 * 1024))
    target_rows = 512 if cap >= 96 * 1024 * 1024 else 256
    return vmem_limit, target_rows


# ----------------------------------------------------------------------------
# Feature probes (run once, eagerly, on tiny inputs; cached).  They guarantee the
# optimized code paths are only used when they lower AND are numerically correct,
# so the main kernel always compiles and runs cleanly.
# ----------------------------------------------------------------------------
_EINSHAPE_CACHE = {}


def _einshape_supported(L, H, hd):
    key = (L, H, hd)
    if key in _EINSHAPE_CACHE:
        return _EINSHAPE_CACHE[key]
    ok = False
    try:
        D = H * hd

        def probe(x_ref, split_ref, rt_ref):
            t = x_ref[...].reshape(L, H, hd)
            th = pltpu.einshape("lhd->hld", t)            # (H, L, hd)
            split_ref[...] = th
            rt_ref[...] = pltpu.einshape("hld->lhd", th).reshape(L, D)

        x = jax.random.normal(jax.random.PRNGKey(123), (L, D), jnp.float32)
        split, rt = pl.pallas_call(
            probe,
            out_shape=(jax.ShapeDtypeStruct((H, L, hd), jnp.float32),
                       jax.ShapeDtypeStruct((L, D), jnp.float32)),
        )(x)
        want = jnp.transpose(x.reshape(L, H, hd), (1, 0, 2))
        ok = bool(jnp.allclose(split, want)) and bool(jnp.allclose(rt, x))
    except Exception:
        ok = False
    _EINSHAPE_CACHE[key] = ok
    return ok


_BUFFERED1 = None


def _buffered1_supported():
    global _BUFFERED1
    if _BUFFERED1 is not None:
        return _BUFFERED1
    ok = False
    try:
        def probe(x_ref, w_ref, o_ref):
            o_ref[...] = x_ref[...] + w_ref[...]

        x = jnp.zeros((2, 8, 128), jnp.float32)
        w = jnp.ones((8, 128), jnp.float32)
        out = pl.pallas_call(
            probe,
            out_shape=jax.ShapeDtypeStruct((2, 8, 128), jnp.float32),
            grid=(2,),
            in_specs=[pl.BlockSpec((1, 8, 128), lambda i: (i, 0, 0)),
                      pl.BlockSpec((8, 128), lambda i: (0, 0),
                                   pipeline_mode=pl.Buffered(1))],
            out_specs=pl.BlockSpec((1, 8, 128), lambda i: (i, 0, 0)),
        )(x, w)
        ok = bool(jnp.allclose(out, 1.0))
    except Exception:
        ok = False
    _BUFFERED1 = ok
    return ok


# ----------------------------------------------------------------------------
# Pallas kernel factory: one ResidualAttentionBlock, block_b batch rows per step.
# ----------------------------------------------------------------------------
def _make_resblock_kernel(n_heads, head_dim, eps, has_mask, block_b, seq_len, width,
                          use_einshape):
    H, hd, Bt, L, D = n_heads, head_dim, block_b, seq_len, width

    def split_heads(t):
        # t: (Bt*L, D)  ->  (batch*, L, hd) head-batched tensor for a single-batch-dim
        # dot_general.  einshape path order = b*H + h; slice-fallback order = h*Bt + b
        # (order only needs to be consistent between split and merge).
        if use_einshape:
            if Bt == 1:
                return pltpu.einshape("lhd->hld", t.reshape(L, H, hd))
            t4 = t.reshape(Bt, L, H, hd)
            parts = [pltpu.einshape("lhd->hld", t4[b]) for b in range(Bt)]
            return jnp.concatenate(parts, axis=0)
        t3 = t.reshape(Bt, L, D)
        return jnp.concatenate([t3[:, :, h * hd:(h + 1) * hd] for h in range(H)],
                               axis=0)

    def merge_heads(o):
        # inverse of split_heads: (batch*, L, hd) -> (Bt*L, D), standard head-major cols
        if use_einshape:
            if Bt == 1:
                return pltpu.einshape("hld->lhd", o).reshape(L, D)
            parts = [pltpu.einshape("hld->lhd", o[b * H:(b + 1) * H]).reshape(L, D)
                     for b in range(Bt)]
            return jnp.concatenate(parts, axis=0)
        cols = [o[h * Bt:(h + 1) * Bt].reshape(Bt * L, hd) for h in range(H)]
        return jnp.concatenate(cols, axis=-1)

    def kernel(*refs):
        if has_mask:
            (x_ref, mask_ref,
             ln1w_ref, ln1b_ref, wqkv_ref, bqkv_ref, wo_ref, bo_ref,
             ln2w_ref, ln2b_ref, wfc_ref, bfc_ref, wpr_ref, bpr_ref,
             o_ref) = refs
        else:
            (x_ref,
             ln1w_ref, ln1b_ref, wqkv_ref, bqkv_ref, wo_ref, bo_ref,
             ln2w_ref, ln2b_ref, wfc_ref, bfc_ref, wpr_ref, bpr_ref,
             o_ref) = refs
            mask_ref = None

        # (Bt, L, D) -> (Bt*L, D); non-matmul math stays f32 (no bf16 VPU on v5e).
        x = x_ref[...].astype(jnp.float32).reshape(Bt * L, D)

        # ---- LayerNorm 1 ----
        xn = _layer_norm_f32(x, ln1w_ref[0], ln1b_ref[0], eps)

        # ---- fused QKV projection (1/sqrt(hd) is pre-folded into the Q columns) ----
        qkv = jnp.dot(xn.astype(jnp.bfloat16), wqkv_ref[...],
                      preferred_element_type=jnp.float32) + bqkv_ref[0]   # (Bt*L, 3D)

        qh = split_heads(qkv[:, :D])          # (batch*, L, hd)
        kh = split_heads(qkv[:, D:2 * D])
        vh = split_heads(qkv[:, 2 * D:])

        # ---- batched-head attention (single-batch-dim dot_generals) ----
        # NOTE: these run the MXU at low column utilization (hd=64 on a 256-wide MXU);
        # accepted per review since attention is a small fraction of layer FLOPs.
        s = jax.lax.dot_general(qh.astype(jnp.bfloat16), kh.astype(jnp.bfloat16),
                                dimension_numbers=(((2,), (2,)), ((0,), (0,))),
                                preferred_element_type=jnp.float32)       # (b*, L, L)
        if mask_ref is not None:
            s = s + mask_ref[...]                                         # additive mask
        m = jnp.maximum(jnp.max(s, axis=-1, keepdims=True), jnp.float32(_NEG_INF))
        p = jnp.exp(s - m)
        denom = jnp.maximum(jnp.sum(p, axis=-1, keepdims=True), jnp.float32(1e-30))
        p = p * pl.reciprocal(denom, approx=True)                         # EUP slot

        o = jax.lax.dot_general(p.astype(jnp.bfloat16), vh.astype(jnp.bfloat16),
                                dimension_numbers=(((2,), (1,)), ((0,), (0,))),
                                preferred_element_type=jnp.float32)       # (b*, L, hd)

        # ---- merge heads + single full-width output projection ----
        attn_in = merge_heads(o)                                          # (Bt*L, D)
        attn = jnp.dot(attn_in.astype(jnp.bfloat16), wo_ref[...],
                       preferred_element_type=jnp.float32) + bo_ref[0]
        x1 = x + attn

        # ---- LayerNorm 2 + MLP: Linear(D,4D) -> erf-GELU -> Linear(4D,D) ----
        xn2 = _layer_norm_f32(x1, ln2w_ref[0], ln2b_ref[0], eps)
        h1 = jnp.dot(xn2.astype(jnp.bfloat16), wfc_ref[...],
                     preferred_element_type=jnp.float32) + bfc_ref[0]
        g = (0.5 * h1 * (1.0 + jax.lax.erf(h1 * 0.7071067811865476))
             ).astype(jnp.bfloat16)                                       # bf16 early
        h2 = jnp.dot(g, wpr_ref[...], preferred_element_type=jnp.float32) + bpr_ref[0]

        o_ref[...] = (x1 + h2).reshape(Bt, L, D).astype(o_ref.dtype)

    return kernel


# ----------------------------------------------------------------------------
# One residual block: pallas_call plumbing.
# ----------------------------------------------------------------------------
def _resblock_call(x_nld, mask, prep, n_heads, use_einshape, single_buffer,
                   vmem_limit, target_rows):
    N, L, D = x_nld.shape
    head_dim = D // n_heads
    block_b = _pick_batch_block(N, L, target_rows)
    has_mask = mask is not None

    weights = (
        prep["ln1_w"], prep["ln1_b"],
        prep["w_qkv"], prep["b_qkv"],
        prep["w_out"], prep["b_out"],
        prep["ln2_w"], prep["ln2_b"],
        prep["w_fc"], prep["b_fc"],
        prep["w_proj"], prep["b_proj"],
    )

    def const_spec(arr):
        nd = arr.ndim
        idx = lambda n, _nd=nd: (0,) * _nd
        if single_buffer:
            # constant-index operand: single-buffer it (halves its VMEM footprint)
            return pl.BlockSpec(arr.shape, idx, pipeline_mode=pl.Buffered(1))
        return pl.BlockSpec(arr.shape, idx)

    in_specs = [pl.BlockSpec((block_b, L, D), lambda n: (n, 0, 0))]
    operands = [x_nld]
    if has_mask:
        in_specs.append(const_spec(mask))
        operands.append(mask)
    in_specs += [const_spec(w) for w in weights]
    operands += list(weights)

    kernel = _make_resblock_kernel(n_heads, head_dim, 1e-5, has_mask, block_b, L, D,
                                   use_einshape)

    return pl.pallas_call(
        kernel,
        out_shape=jax.ShapeDtypeStruct((N, L, D), x_nld.dtype),
        grid=(N // block_b,),
        in_specs=in_specs,
        out_specs=pl.BlockSpec((block_b, L, D), lambda n: (n, 0, 0)),
        input_output_aliases={0: 0},          # residual stream updated in place
        compiler_params=pltpu.CompilerParams(
            dimension_semantics=("parallel",),
            vmem_limit_bytes=vmem_limit,
        ),
    )(*operands)


# ----------------------------------------------------------------------------
# Parameter preparation: PyTorch-native params -> fused / transposed / scaled
# bf16 kernel weights (1/sqrt(head_dim) folded into Q).
# ----------------------------------------------------------------------------
def _prepare_layer(p, n_heads):
    D = p["ln1_w"].shape[0]
    hd = D // n_heads
    scale = 1.0 / math.sqrt(hd)
    q_scale = jnp.concatenate([jnp.full((D,), scale, jnp.float32),
                               jnp.ones((2 * D,), jnp.float32)])
    w_qkv = (p["in_proj_w"] * q_scale[:, None]).T          # (D, 3D), cols [q|k|v]
    b_qkv = (p["in_proj_b"] * q_scale)[None, :]
    return {
        "ln1_w": p["ln1_w"][None, :], "ln1_b": p["ln1_b"][None, :],
        "w_qkv": w_qkv.astype(jnp.bfloat16), "b_qkv": b_qkv,
        "w_out": p["out_w"].T.astype(jnp.bfloat16), "b_out": p["out_b"][None, :],
        "ln2_w": p["ln2_w"][None, :], "ln2_b": p["ln2_b"][None, :],
        "w_fc": p["fc_w"].T.astype(jnp.bfloat16), "b_fc": p["fc_b"][None, :],
        "w_proj": p["proj_w"].T.astype(jnp.bfloat16), "b_proj": p["proj_b"][None, :],
    }


def _to_additive(attn_mask):
    if attn_mask.dtype == jnp.bool_:
        # PyTorch bool mask: True = masked
        return jnp.where(attn_mask, jnp.float32(_NEG_INF), jnp.float32(0.0))
    return attn_mask.astype(jnp.float32)


# ----------------------------------------------------------------------------
# Transformer forward: PyTorch (L, N, D) in / out.
# ----------------------------------------------------------------------------
def transformer_forward(x_lnd, layer_params, n_heads, attn_mask=None):
    L, N, D = x_lnd.shape
    hd = D // n_heads
    pad = (-L) % 8                      # sublane-align the token dimension
    Lp = L + pad

    if pad == 0:
        mask = None if attn_mask is None else _to_additive(attn_mask)
    else:
        base = (jnp.zeros((L, L), jnp.float32) if attn_mask is None
                else _to_additive(attn_mask))
        mask = jnp.full((Lp, Lp), jnp.float32(_NEG_INF))
        mask = mask.at[:L, :L].set(base)
        mask = mask.at[L:, :L].set(0.0)   # padded query rows stay finite (dropped later)
        # padded key columns stay at _NEG_INF: real tokens never attend to padding

    use_einshape = _einshape_supported(Lp, n_heads, hd)
    single_buffer = _buffered1_supported()
    vmem_limit, target_rows = _hw_config()

    x = jnp.transpose(x_lnd, (1, 0, 2))                    # (N, L, D)
    if pad:
        x = jnp.pad(x, ((0, 0), (0, pad), (0, 0)))

    # TODO(synk): prefetch next layer's weights during the current layer via a
    # cross-pallas_call DMA future (P10) to hide per-layer HBM weight traffic.
    for p in layer_params:
        prep = _prepare_layer(p, n_heads)
        x = _resblock_call(x, mask, prep, n_heads, use_einshape, single_buffer,
                           vmem_limit, target_rows)
    if pad:
        x = x[:, :L, :]
    return jnp.transpose(x, (1, 0, 2))                     # (L, N, D)


# ----------------------------------------------------------------------------
# Deterministic parameter init in PyTorch-native layout.  Matmul weights are made
# bf16-representable so the kernel's bf16 cast is lossless vs the f32 reference.
# ----------------------------------------------------------------------------
def init_transformer_params(key, width, layers, n_heads):
    D = width
    s = 0.02

    def bf16able(k, shape):
        return (jax.random.normal(k, shape, jnp.float32) * s
                ).astype(jnp.bfloat16).astype(jnp.float32)

    params = []
    for l in range(layers):
        k = jax.random.fold_in(key, l)
        ks = jax.random.split(k, 10)
        p = {
            "ln1_w": 1.0 + 0.1 * jax.random.normal(ks[8], (D,), jnp.float32),
            "ln1_b": 0.1 * jax.random.normal(ks[9], (D,), jnp.float32),
            "in_proj_w": bf16able(ks[0], (3 * D, D)),      # rows = [q|k|v]
            "in_proj_b": jax.random.normal(ks[1], (3 * D,), jnp.float32) * s,
            "out_w": bf16able(ks[2], (D, D)),
            "out_b": jax.random.normal(ks[3], (D,), jnp.float32) * s,
            "ln2_w": jnp.ones((D,), jnp.float32),
            "ln2_b": jnp.zeros((D,), jnp.float32),
            "fc_w": bf16able(ks[4], (4 * D, D)),
            "fc_b": jax.random.normal(ks[5], (4 * D,), jnp.float32) * s,
            "proj_w": bf16able(ks[6], (D, 4 * D)),
            "proj_b": jax.random.normal(ks[7], (D,), jnp.float32) * s,
        }
        params.append(p)
    return params


# ----------------------------------------------------------------------------
# Pure-JAX f32 reference (PyTorch nn.MultiheadAttention / erf-GELU semantics).
# ----------------------------------------------------------------------------
def _reference_forward(x_lnd, layer_params, n_heads, attn_mask=None):
    L, N, D = x_lnd.shape
    H = n_heads
    hd = D // H
    amask = None
    if attn_mask is not None:
        if attn_mask.dtype == jnp.bool_:
            amask = jnp.where(attn_mask, -jnp.inf, 0.0).astype(jnp.float32)
        else:
            amask = attn_mask.astype(jnp.float32)

    def ln(x, w, b, eps=1e-5):
        mu = jnp.mean(x, -1, keepdims=True)
        var = jnp.mean((x - mu) ** 2, -1, keepdims=True)
        return (x - mu) * jax.lax.rsqrt(var + eps) * w + b

    x = jnp.transpose(x_lnd, (1, 0, 2)).astype(jnp.float32)      # (N, L, D)
    for p in layer_params:
        xn = ln(x, p["ln1_w"], p["ln1_b"])
        qkv = xn @ p["in_proj_w"].T + p["in_proj_b"]
        q, k, v = qkv[..., :D], qkv[..., D:2 * D], qkv[..., 2 * D:]
        q = q.reshape(N, L, H, hd).transpose(0, 2, 1, 3) / math.sqrt(hd)
        k = k.reshape(N, L, H, hd).transpose(0, 2, 1, 3)
        v = v.reshape(N, L, H, hd).transpose(0, 2, 1, 3)
        s = jnp.einsum("nhqd,nhkd->nhqk", q, k)
        if amask is not None:
            s = s + amask
        pr = jax.nn.softmax(s, axis=-1)
        o = jnp.einsum("nhqk,nhkd->nhqd", pr, v).transpose(0, 2, 1, 3).reshape(N, L, D)
        x = x + o @ p["out_w"].T + p["out_b"]

        xn2 = ln(x, p["ln2_w"], p["ln2_b"])
        h1 = xn2 @ p["fc_w"].T + p["fc_b"]
        g = 0.5 * h1 * (1.0 + jax.lax.erf(h1 * 0.7071067811865476))
        x = x + g @ p["proj_w"].T + p["proj_b"]
    return jnp.transpose(x, (1, 0, 2))


if __name__ == "__main__":
    width, layers, n_heads = 32, 2, 4
    L, N = 8, 2

    key = jax.random.PRNGKey(0)
    kx, kp = jax.random.split(key)
    x = jax.random.normal(kx, (L, N, width), jnp.float32)        # (seq, batch, width)
    params = init_transformer_params(kp, width, layers, n_heads)

    # ---- no-mask path ----
    fwd = jax.jit(lambda x_, p_: transformer_forward(x_, p_, n_heads))
    out = jax.block_until_ready(fwd(x, params))
    ref = _reference_forward(x, params, n_heads)
    assert out.shape == (L, N, width)
    err = float(jnp.max(jnp.abs(out - ref)))
    # bf16 matmul operands + approx reciprocal vs f32 reference -> loose tolerance.
    assert jnp.allclose(out, ref, atol=5e-2, rtol=5e-2), f"no-mask mismatch: {err}"

    # ---- causal bool-mask path (True = masked, PyTorch convention) ----
    causal = jnp.triu(jnp.ones((L, L), jnp.bool_), k=1)
    fwd_m = jax.jit(lambda x_, p_, m_: transformer_forward(x_, p_, n_heads, m_))
    out_m = jax.block_until_ready(fwd_m(x, params, causal))
    ref_m = _reference_forward(x, params, n_heads, causal)
    err_m = float(jnp.max(jnp.abs(out_m - ref_m)))
    assert jnp.allclose(out_m, ref_m, atol=5e-2, rtol=5e-2), f"mask mismatch: {err_m}"

    print("KERNEL_OK")
</pallas_src>

<mosaic_0001>
module attributes {stable_mosaic.version = 11 : i64} {
  func.func @kernel(%arg0: i32, %arg1: memref<1x8x32xf32, #tpu.memory_space<vmem>>, %arg2: memref<1x32xf32, #tpu.memory_space<vmem>>, %arg3: memref<1x32xf32, #tpu.memory_space<vmem>>, %arg4: memref<32x96xbf16, #tpu.memory_space<vmem>>, %arg5: memref<1x96xf32, #tpu.memory_space<vmem>>, %arg6: memref<32x32xbf16, #tpu.memory_space<vmem>>, %arg7: memref<1x32xf32, #tpu.memory_space<vmem>>, %arg8: memref<1x32xf32, #tpu.memory_space<vmem>>, %arg9: memref<1x32xf32, #tpu.memory_space<vmem>>, %arg10: memref<32x128xbf16, #tpu.memory_space<vmem>>, %arg11: memref<1x128xf32, #tpu.memory_space<vmem>>, %arg12: memref<128x32xbf16, #tpu.memory_space<vmem>>, %arg13: memref<1x32xf32, #tpu.memory_space<vmem>>, %arg14: memref<1x8x32xf32, #tpu.memory_space<vmem>>) attributes {dimension_semantics = [#tpu.dimension_semantics<parallel>], iteration_bounds = array<i64: 2>, scalar_prefetch = 0 : i64, scratch_operands = 0 : i64, tpu.core_type = #tpu.core_type<tc>, window_params = [{transform_indices = @transform_0, window_bounds = array<i64: 1, 8, 32>}, {pipeline_mode = #tpu.pipeline_mode<synchronous>, transform_indices = @transform_1, window_bounds = array<i64: 1, 32>}, {pipeline_mode = #tpu.pipeline_mode<synchronous>, transform_indices = @transform_2, window_bounds = array<i64: 1, 32>}, {pipeline_mode = #tpu.pipeline_mode<synchronous>, transform_indices = @transform_3, window_bounds = array<i64: 32, 96>}, {pipeline_mode = #tpu.pipeline_mode<synchronous>, transform_indices = @transform_4, window_bounds = array<i64: 1, 96>}, {pipeline_mode = #tpu.pipeline_mode<synchronous>, transform_indices = @transform_5, window_bounds = array<i64: 32, 32>}, {pipeline_mode = #tpu.pipeline_mode<synchronous>, transform_indices = @transform_6, window_bounds = array<i64: 1, 32>}, {pipeline_mode = #tpu.pipeline_mode<synchronous>, transform_indices = @transform_7, window_bounds = array<i64: 1, 32>}, {pipeline_mode = #tpu.pipeline_mode<synchronous>, transform_indices = @transform_8, window_bounds = array<i64: 1, 32>}, {pipeline_mode = #tpu.pipeline_mode<synchronous>, transform_indices = @transform_9, window_bounds = array<i64: 32, 128>}, {pipeline_mode = #tpu.pipeline_mode<synchronous>, transform_indices = @transform_10, window_bounds = array<i64: 1, 128>}, {pipeline_mode = #tpu.pipeline_mode<synchronous>, transform_indices = @transform_11, window_bounds = array<i64: 128, 32>}, {pipeline_mode = #tpu.pipeline_mode<synchronous>, transform_indices = @transform_12, window_bounds = array<i64: 1, 32>}, {transform_indices = @transform_13, window_bounds = array<i64: 1, 8, 32>}]} {
    %c0 = arith.constant 0 : index
    %c0_0 = arith.constant 0 : index
    %c0_1 = arith.constant 0 : index
    %0 = vector.load %arg1[%c0, %c0_0, %c0_1] : memref<1x8x32xf32, #tpu.memory_space<vmem>>, vector<1x8x32xf32>
    %1 = vector.shape_cast %0 : vector<1x8x32xf32> to vector<8x32xf32>
    %c0_2 = arith.constant 0 : index
    %c0_3 = arith.constant 0 : index
    %2 = vector.load %arg2[%c0_2, %c0_3] : memref<1x32xf32, #tpu.memory_space<vmem>>, vector<1x32xf32>
    %3 = vector.shape_cast %2 : vector<1x32xf32> to vector<32xf32>
    %c0_4 = arith.constant 0 : index
    %c0_5 = arith.constant 0 : index
    %4 = vector.load %arg3[%c0_4, %c0_5] : memref<1x32xf32, #tpu.memory_space<vmem>>, vector<1x32xf32>
    %5 = vector.shape_cast %4 : vector<1x32xf32> to vector<32xf32>
    %cst = arith.constant dense<0.000000e+00> : vector<8xf32>
    %6 = vector.multi_reduction <add>, %1, %cst [1] : vector<8x32xf32> to vector<8xf32>
    %7 = vector.shape_cast %6 : vector<8xf32> to vector<8x1xf32>
    %cst_6 = arith.constant 3.200000e+01 : f32
    %8 = vector.broadcast %cst_6 : f32 to vector<8x1xf32>
    %9 = arith.divf %7, %8 : vector<8x1xf32>
    %10 = vector.broadcast %9 : vector<8x1xf32> to vector<8x32xf32>
    %11 = arith.subf %1, %10 : vector<8x32xf32>
    %12 = arith.mulf %11, %11 : vector<8x32xf32>
    %cst_7 = arith.constant dense<0.000000e+00> : vector<8xf32>
    %13 = vector.multi_reduction <add>, %12, %cst_7 [1] : vector<8x32xf32> to vector<8xf32>
    %14 = vector.shape_cast %13 : vector<8xf32> to vector<8x1xf32>
    %cst_8 = arith.constant 3.200000e+01 : f32
    %15 = vector.broadcast %cst_8 : f32 to vector<8x1xf32>
    %16 = arith.divf %14, %15 : vector<8x1xf32>
    %17 = vector.broadcast %9 : vector<8x1xf32> to vector<8x32xf32>
    %18 = arith.subf %1, %17 : vector<8x32xf32>
    %cst_9 = arith.constant 9.99999974E-6 : f32
    %19 = vector.broadcast %cst_9 : f32 to vector<8x1xf32>
    %20 = arith.addf %16, %19 : vector<8x1xf32>
    %21 = math.rsqrt %20 : vector<8x1xf32>
    %22 = vector.broadcast %21 : vector<8x1xf32> to vector<8x32xf32>
    %23 = arith.mulf %18, %22 : vector<8x32xf32>
    %24 = vector.shape_cast %3 : vector<32xf32> to vector<1x32xf32>
    %25 = vector.broadcast %24 : vector<1x32xf32> to vector<8x32xf32>
    %26 = arith.mulf %23, %25 : vector<8x32xf32>
    %27 = vector.shape_cast %5 : vector<32xf32> to vector<1x32xf32>
    %28 = vector.broadcast %27 : vector<1x32xf32> to vector<8x32xf32>
    %29 = arith.addf %26, %28 : vector<8x32xf32>
    %30 = arith.truncf %29 : vector<8x32xf32> to vector<8x32xbf16>
    %c0_10 = arith.constant 0 : index
    %c0_11 = arith.constant 0 : index
    %31 = vector.load %arg4[%c0_10, %c0_11] : memref<32x96xbf16, #tpu.memory_space<vmem>>, vector<32x96xbf16>
    %cst_12 = arith.constant dense<0.000000e+00> : vector<8x96xf32>
    %32 = tpu.matmul %30, %31, %cst_12 {dimension_numbers = #tpu.dot_dimension_numbers<[1], [0], [0], [1], [0, 0, 1, 1], [], []>} : vector<8x32xbf16>, vector<32x96xbf16>, vector<8x96xf32> -> vector<8x96xf32>
    %c0_13 = arith.constant 0 : index
    %c0_14 = arith.constant 0 : index
    %33 = vector.load %arg5[%c0_13, %c0_14] : memref<1x96xf32, #tpu.memory_space<vmem>>, vector<1x96xf32>
    %34 = vector.shape_cast %33 : vector<1x96xf32> to vector<96xf32>
    %35 = vector.shape_cast %34 : vector<96xf32> to vector<1x96xf32>
    %36 = vector.broadcast %35 : vector<1x96xf32> to vector<8x96xf32>
    %37 = arith.addf %32, %36 : vector<8x96xf32>
    %38 = vector.extract_strided_slice %37 {offsets = [0, 0], sizes = [8, 32], strides = [1, 1]} : vector<8x96xf32> to vector<8x32xf32>
    %39 = vector.shape_cast %38 : vector<8x32xf32> to vector<1x8x32xf32>
    %40 = vector.extract_strided_slice %39 {offsets = [0, 0, 0], sizes = [1, 8, 8], strides = [1, 1, 1]} : vector<1x8x32xf32> to vector<1x8x8xf32>
    %41 = vector.extract_strided_slice %39 {offsets = [0, 0, 8], sizes = [1, 8, 8], strides = [1, 1, 1]} : vector<1x8x32xf32> to vector<1x8x8xf32>
    %42 = vector.extract_strided_slice %39 {offsets = [0, 0, 16], sizes = [1, 8, 8], strides = [1, 1, 1]} : vector<1x8x32xf32> to vector<1x8x8xf32>
    %43 = vector.extract_strided_slice %39 {offsets = [0, 0, 24], sizes = [1, 8, 8], strides = [1, 1, 1]} : vector<1x8x32xf32> to vector<1x8x8xf32>
    %44 = tpu.concatenate %40, %41, %42, %43 in 0 : vector<1x8x8xf32>, vector<1x8x8xf32>, vector<1x8x8xf32>, vector<1x8x8xf32> -> vector<4x8x8xf32>
    %45 = vector.extract_strided_slice %37 {offsets = [0, 32], sizes = [8, 32], strides = [1, 1]} : vector<8x96xf32> to vector<8x32xf32>
    %46 = vector.shape_cast %45 : vector<8x32xf32> to vector<1x8x32xf32>
    %47 = vector.extract_strided_slice %46 {offsets = [0, 0, 0], sizes = [1, 8, 8], strides = [1, 1, 1]} : vector<1x8x32xf32> to vector<1x8x8xf32>
    %48 = vector.extract_strided_slice %46 {offsets = [0, 0, 8], sizes = [1, 8, 8], strides = [1, 1, 1]} : vector<1x8x32xf32> to vector<1x8x8xf32>
    %49 = vector.extract_strided_slice %46 {offsets = [0, 0, 16], sizes = [1, 8, 8], strides = [1, 1, 1]} : vector<1x8x32xf32> to vector<1x8x8xf32>
    %50 = vector.extract_strided_slice %46 {offsets = [0, 0, 24], sizes = [1, 8, 8], strides = [1, 1, 1]} : vector<1x8x32xf32> to vector<1x8x8xf32>
    %51 = tpu.concatenate %47, %48, %49, %50 in 0 : vector<1x8x8xf32>, vector<1x8x8xf32>, vector<1x8x8xf32>, vector<1x8x8xf32> -> vector<4x8x8xf32>
    %52 = vector.extract_strided_slice %37 {offsets = [0, 64], sizes = [8, 32], strides = [1, 1]} : vector<8x96xf32> to vector<8x32xf32>
    %53 = vector.shape_cast %52 : vector<8x32xf32> to vector<1x8x32xf32>
    %54 = vector.extract_strided_slice %53 {offsets = [0, 0, 0], sizes = [1, 8, 8], strides = [1, 1, 1]} : vector<1x8x32xf32> to vector<1x8x8xf32>
    %55 = vector.extract_strided_slice %53 {offsets = [0, 0, 8], sizes = [1, 8, 8], strides = [1, 1, 1]} : vector<1x8x32xf32> to vector<1x8x8xf32>
    %56 = vector.extract_strided_slice %53 {offsets = [0, 0, 16], sizes = [1, 8, 8], strides = [1, 1, 1]} : vector<1x8x32xf32> to vector<1x8x8xf32>
    %57 = vector.extract_strided_slice %53 {offsets = [0, 0, 24], sizes = [1, 8, 8], strides = [1, 1, 1]} : vector<1x8x32xf32> to vector<1x8x8xf32>
    %58 = tpu.concatenate %54, %55, %56, %57 in 0 : vector<1x8x8xf32>, vector<1x8x8xf32>, vector<1x8x8xf32>, vector<1x8x8xf32> -> vector<4x8x8xf32>
    %59 = arith.truncf %44 : vector<4x8x8xf32> to vector<4x8x8xbf16>
    %60 = arith.truncf %51 : vector<4x8x8xf32> to vector<4x8x8xbf16>
    %cst_15 = arith.constant dense<0.000000e+00> : vector<4x8x8xf32>
    %61 = tpu.matmul %59, %60, %cst_15 {dimension_numbers = #tpu.dot_dimension_numbers<[2], [2], [1], [1], [0, 0, 0, 1, 1, 1], [0], [0]>} : vector<4x8x8xbf16>, vector<4x8x8xbf16>, vector<4x8x8xf32> -> vector<4x8x8xf32>
    %cst_16 = arith.constant dense<0xFF800000> : vector<4x8xf32>
    %62 = vector.multi_reduction <maximumf>, %61, %cst_16 [2] : vector<4x8x8xf32> to vector<4x8xf32>
    %63 = vector.shape_cast %62 : vector<4x8xf32> to vector<4x8x1xf32>
    %cst_17 = arith.constant -1.000000e+30 : f32
    %64 = vector.broadcast %cst_17 : f32 to vector<4x8x1xf32>
    %65 = arith.maximumf %63, %64 : vector<4x8x1xf32>
    %66 = vector.broadcast %65 : vector<4x8x1xf32> to vector<4x8x8xf32>
    %67 = arith.subf %61, %66 : vector<4x8x8xf32>
    %68 = math.exp %67 : vector<4x8x8xf32>
    %cst_18 = arith.constant dense<0.000000e+00> : vector<4x8xf32>
    %69 = vector.multi_reduction <add>, %68, %cst_18 [2] : vector<4x8x8xf32> to vector<4x8xf32>
    %70 = vector.shape_cast %69 : vector<4x8xf32> to vector<4x8x1xf32>
    %cst_19 = arith.constant 1.000000e-30 : f32
    %71 = vector.broadcast %cst_19 : f32 to vector<4x8x1xf32>
    %72 = arith.maximumf %70, %71 : vector<4x8x1xf32>
    %73 = tpu.reciprocal %72 {approx = true} : vector<4x8x1xf32> -> vector<4x8x1xf32>
    %74 = vector.broadcast %73 : vector<4x8x1xf32> to vector<4x8x8xf32>
    %75 = arith.mulf %68, %74 : vector<4x8x8xf32>
    %76 = arith.truncf %75 : vector<4x8x8xf32> to vector<4x8x8xbf16>
    %77 = arith.truncf %58 : vector<4x8x8xf32> to vector<4x8x8xbf16>
    %cst_20 = arith.constant dense<0.000000e+00> : vector<4x8x8xf32>
    %78 = tpu.matmul %76, %77, %cst_20 {dimension_numbers = #tpu.dot_dimension_numbers<[2], [1], [1], [2], [0, 0, 0, 1, 1, 2], [0], [0]>} : vector<4x8x8xbf16>, vector<4x8x8xbf16>, vector<4x8x8xf32> -> vector<4x8x8xf32>
    %79 = vector.extract_strided_slice %78 {offsets = [0, 0, 0], sizes = [1, 8, 8], strides = [1, 1, 1]} : vector<4x8x8xf32> to vector<1x8x8xf32>
    %80 = vector.shape_cast %79 : vector<1x8x8xf32> to vector<8x8xf32>
    %81 = vector.extract_strided_slice %78 {offsets = [1, 0, 0], sizes = [1, 8, 8], strides = [1, 1, 1]} : vector<4x8x8xf32> to vector<1x8x8xf32>
    %82 = vector.shape_cast %81 : vector<1x8x8xf32> to vector<8x8xf32>
    %83 = vector.extract_strided_slice %78 {offsets = [2, 0, 0], sizes = [1, 8, 8], strides = [1, 1, 1]} : vector<4x8x8xf32> to vector<1x8x8xf32>
    %84 = vector.shape_cast %83 : vector<1x8x8xf32> to vector<8x8xf32>
    %85 = vector.extract_strided_slice %78 {offsets = [3, 0, 0], sizes = [1, 8, 8], strides = [1, 1, 1]} : vector<4x8x8xf32> to vector<1x8x8xf32>
    %86 = vector.shape_cast %85 : vector<1x8x8xf32> to vector<8x8xf32>
    %87 = tpu.concatenate %80, %82, %84, %86 in 1 : vector<8x8xf32>, vector<8x8xf32>, vector<8x8xf32>, vector<8x8xf32> -> vector<8x32xf32>
    %88 = arith.truncf %87 : vector<8x32xf32> to vector<8x32xbf16>
    %c0_21 = arith.constant 0 : index
    %c0_22 = arith.constant 0 : index
    %89 = vector.load %arg6[%c0_21, %c0_22] : memref<32x32xbf16, #tpu.memory_space<vmem>>, vector<32x32xbf16>
    %cst_23 = arith.constant dense<0.000000e+00> : vector<8x32xf32>
    %90 = tpu.matmul %88, %89, %cst_23 {dimension_numbers = #tpu.dot_dimension_numbers<[1], [0], [0], [1], [0, 0, 1, 1], [], []>} : vector<8x32xbf16>, vector<32x32xbf16>, vector<8x32xf32> -> vector<8x32xf32>
    %c0_24 = arith.constant 0 : index
    %c0_25 = arith.constant 0 : index
    %91 = vector.load %arg7[%c0_24, %c0_25] : memref<1x32xf32, #tpu.memory_space<vmem>>, vector<1x32xf32>
    %92 = vector.shape_cast %91 : vector<1x32xf32> to vector<32xf32>
    %93 = vector.shape_cast %92 : vector<32xf32> to vector<1x32xf32>
    %94 = vector.broadcast %93 : vector<1x32xf32> to vector<8x32xf32>
    %95 = arith.addf %90, %94 : vector<8x32xf32>
    %96 = arith.addf %1, %95 : vector<8x32xf32>
    %c0_26 = arith.constant 0 : index
    %c0_27 = arith.constant 0 : index
    %97 = vector.load %arg8[%c0_26, %c0_27] : memref<1x32xf32, #tpu.memory_space<vmem>>, vector<1x32xf32>
    %98 = vector.shape_cast %97 : vector<1x32xf32> to vector<32xf32>
    %c0_28 = arith.constant 0 : index
    %c0_29 = arith.constant 0 : index
    %99 = vector.load %arg9[%c0_28, %c0_29] : memref<1x32xf32, #tpu.memory_space<vmem>>, vector<1x32xf32>
    %100 = vector.shape_cast %99 : vector<1x32xf32> to vector<32xf32>
    %cst_30 = arith.constant dense<0.000000e+00> : vector<8xf32>
    %101 = vector.multi_reduction <add>, %96, %cst_30 [1] : vector<8x32xf32> to vector<8xf32>
    %102 = vector.shape_cast %101 : vector<8xf32> to vector<8x1xf32>
    %cst_31 = arith.constant 3.200000e+01 : f32
    %103 = vector.broadcast %cst_31 : f32 to vector<8x1xf32>
    %104 = arith.divf %102, %103 : vector<8x1xf32>
    %105 = vector.broadcast %104 : vector<8x1xf32> to vector<8x32xf32>
    %106 = arith.subf %96, %105 : vector<8x32xf32>
    %107 = arith.mulf %106, %106 : vector<8x32xf32>
    %cst_32 = arith.constant dense<0.000000e+00> : vector<8xf32>
    %108 = vector.multi_reduction <add>, %107, %cst_32 [1] : vector<8x32xf32> to vector<8xf32>
    %109 = vector.shape_cast %108 : vector<8xf32> to vector<8x1xf32>
    %cst_33 = arith.constant 3.200000e+01 : f32
    %110 = vector.broadcast %cst_33 : f32 to vector<8x1xf32>
    %111 = arith.divf %109, %110 : vector<8x1xf32>
    %112 = vector.broadcast %104 : vector<8x1xf32> to vector<8x32xf32>
    %113 = arith.subf %96, %112 : vector<8x32xf32>
    %cst_34 = arith.constant 9.99999974E-6 : f32
    %114 = vector.broadcast %cst_34 : f32 to vector<8x1xf32>
    %115 = arith.addf %111, %114 : vector<8x1xf32>
    %116 = math.rsqrt %115 : vector<8x1xf32>
    %117 = vector.broadcast %116 : vector<8x1xf32> to vector<8x32xf32>
    %118 = arith.mulf %113, %117 : vector<8x32xf32>
    %119 = vector.shape_cast %98 : vector<32xf32> to vector<1x32xf32>
    %120 = vector.broadcast %119 : vector<1x32xf32> to vector<8x32xf32>
    %121 = arith.mulf %118, %120 : vector<8x32xf32>
    %122 = vector.shape_cast %100 : vector<32xf32> to vector<1x32xf32>
    %123 = vector.broadcast %122 : vector<1x32xf32> to vector<8x32xf32>
    %124 = arith.addf %121, %123 : vector<8x32xf32>
    %125 = arith.truncf %124 : vector<8x32xf32> to vector<8x32xbf16>
    %c0_35 = arith.constant 0 : index
    %c0_36 = arith.constant 0 : index
    %126 = vector.load %arg10[%c0_35, %c0_36] : memref<32x128xbf16, #tpu.memory_space<vmem>>, vector<32x128xbf16>
    %cst_37 = arith.constant dense<0.000000e+00> : vector<8x128xf32>
    %127 = tpu.matmul %125, %126, %cst_37 {dimension_numbers = #tpu.dot_dimension_numbers<[1], [0], [0], [1], [0, 0, 1, 1], [], []>} : vector<8x32xbf16>, vector<32x128xbf16>, vector<8x128xf32> -> vector<8x128xf32>
    %c0_38 = arith.constant 0 : index
    %c0_39 = arith.constant 0 : index
    %128 = vector.load %arg11[%c0_38, %c0_39] : memref<1x128xf32, #tpu.memory_space<vmem>>, vector<1x128xf32>
    %129 = vector.shape_cast %128 : vector<1x128xf32> to vector<128xf32>
    %130 = vector.shape_cast %129 : vector<128xf32> to vector<1x128xf32>
    %131 = vector.broadcast %130 : vector<1x128xf32> to vector<8x128xf32>
    %132 = arith.addf %127, %131 : vector<8x128xf32>
    %cst_40 = arith.constant 5.000000e-01 : f32
    %133 = vector.broadcast %cst_40 : f32 to vector<8x128xf32>
    %134 = arith.mulf %133, %132 : vector<8x128xf32>
    %cst_41 = arith.constant 0.707106769 : f32
    %135 = vector.broadcast %cst_41 : f32 to vector<8x128xf32>
    %136 = arith.mulf %132, %135 : vector<8x128xf32>
    %137 = math.erf %136 : vector<8x128xf32>
    %cst_42 = arith.constant 1.000000e+00 : f32
    %138 = vector.broadcast %cst_42 : f32 to vector<8x128xf32>
    %139 = arith.addf %138, %137 : vector<8x128xf32>
    %140 = arith.mulf %134, %139 : vector<8x128xf32>
    %141 = arith.truncf %140 : vector<8x128xf32> to vector<8x128xbf16>
    %c0_43 = arith.constant 0 : index
    %c0_44 = arith.constant 0 : index
    %142 = vector.load %arg12[%c0_43, %c0_44] : memref<128x32xbf16, #tpu.memory_space<vmem>>, vector<128x32xbf16>
    %cst_45 = arith.constant dense<0.000000e+00> : vector<8x32xf32>
    %143 = tpu.matmul %141, %142, %cst_45 {dimension_numbers = #tpu.dot_dimension_numbers<[1], [0], [0], [1], [0, 0, 1, 1], [], []>} : vector<8x128xbf16>, vector<128x32xbf16>, vector<8x32xf32> -> vector<8x32xf32>
    %c0_46 = arith.constant 0 : index
    %c0_47 = arith.constant 0 : index
    %144 = vector.load %arg13[%c0_46, %c0_47] : memref<1x32xf32, #tpu.memory_space<vmem>>, vector<1x32xf32>
    %145 = vector.shape_cast %144 : vector<1x32xf32> to vector<32xf32>
    %146 = vector.shape_cast %145 : vector<32xf32> to vector<1x32xf32>
    %147 = vector.broadcast %146 : vector<1x32xf32> to vector<8x32xf32>
    %148 = arith.addf %143, %147 : vector<8x32xf32>
    %149 = arith.addf %96, %148 : vector<8x32xf32>
    %150 = vector.shape_cast %149 : vector<8x32xf32> to vector<1x8x32xf32>
    %c0_48 = arith.constant 0 : index
    %c0_49 = arith.constant 0 : index
    %c0_50 = arith.constant 0 : index
    %151 = vector.load %arg14[%c0_48, %c0_49, %c0_50] : memref<1x8x32xf32, #tpu.memory_space<vmem>>, vector<1x8x32xf32>
    tpu.vector_store %arg14[%c0_48, %c0_49, %c0_50], %150 {strides = array<i32>} : memref<1x8x32xf32, #tpu.memory_space<vmem>>, vector<1x8x32xf32>,
    return
  }
  func.func @transform_0(%arg0: i32) -> (i32, i32, i32) {
    %c0_i32 = arith.constant 0 : i32
    %c0_i32_0 = arith.constant 0 : i32
    %c0_i32_1 = arith.constant 0 : i32
    return %arg0, %c0_i32, %c0_i32_0 : i32, i32, i32
  }
  func.func @transform_1(%arg0: i32) -> (i32, i32) {
    %c0_i32 = arith.constant 0 : i32
    %c0_i32_0 = arith.constant 0 : i32
    %c0_i32_1 = arith.constant 0 : i32
    return %c0_i32, %c0_i32_0 : i32, i32
  }
  func.func @transform_2(%arg0: i32) -> (i32, i32) {
    %c0_i32 = arith.constant 0 : i32
    %c0_i32_0 = arith.constant 0 : i32
    %c0_i32_1 = arith.constant 0 : i32
    return %c0_i32, %c0_i32_0 : i32, i32
  }
  func.func @transform_3(%arg0: i32) -> (i32, i32) {
    %c0_i32 = arith.constant 0 : i32
    %c0_i32_0 = arith.constant 0 : i32
    %c0_i32_1 = arith.constant 0 : i32
    return %c0_i32, %c0_i32_0 : i32, i32
  }
  func.func @transform_4(%arg0: i32) -> (i32, i32) {
    %c0_i32 = arith.constant 0 : i32
    %c0_i32_0 = arith.constant 0 : i32
    %c0_i32_1 = arith.constant 0 : i32
    return %c0_i32, %c0_i32_0 : i32, i32
  }
  func.func @transform_5(%arg0: i32) -> (i32, i32) {
    %c0_i32 = arith.constant 0 : i32
    %c0_i32_0 = arith.constant 0 : i32
    %c0_i32_1 = arith.constant 0 : i32
    return %c0_i32, %c0_i32_0 : i32, i32
  }
  func.func @transform_6(%arg0: i32) -> (i32, i32) {
    %c0_i32 = arith.constant 0 : i32
    %c0_i32_0 = arith.constant 0 : i32
    %c0_i32_1 = arith.constant 0 : i32
    return %c0_i32, %c0_i32_0 : i32, i32
  }
  func.func @transform_7(%arg0: i32) -> (i32, i32) {
    %c0_i32 = arith.constant 0 : i32
    %c0_i32_0 = arith.constant 0 : i32
    %c0_i32_1 = arith.constant 0 : i32
    return %c0_i32, %c0_i32_0 : i32, i32
  }
  func.func @transform_8(%arg0: i32) -> (i32, i32) {
    %c0_i32 = arith.constant 0 : i32
    %c0_i32_0 = arith.constant 0 : i32
    %c0_i32_1 = arith.constant 0 : i32
    return %c0_i32, %c0_i32_0 : i32, i32
  }
  func.func @transform_9(%arg0: i32) -> (i32, i32) {
    %c0_i32 = arith.constant 0 : i32
    %c0_i32_0 = arith.constant 0 : i32
    %c0_i32_1 = arith.constant 0 : i32
    return %c0_i32, %c0_i32_0 : i32, i32
  }
  func.func @transform_10(%arg0: i32) -> (i32, i32) {
    %c0_i32 = arith.constant 0 : i32
    %c0_i32_0 = arith.constant 0 : i32
    %c0_i32_1 = arith.constant 0 : i32
    return %c0_i32, %c0_i32_0 : i32, i32
  }
  func.func @transform_11(%arg0: i32) -> (i32, i32) {
    %c0_i32 = arith.constant 0 : i32
    %c0_i32_0 = arith.constant 0 : i32
    %c0_i32_1 = arith.constant 0 : i32
    return %c0_i32, %c0_i32_0 : i32, i32
  }
  func.func @transform_12(%arg0: i32) -> (i32, i32) {
    %c0_i32 = arith.constant 0 : i32
    %c0_i32_0 = arith.constant 0 : i32
    %c0_i32_1 = arith.constant 0 : i32
    return %c0_i32, %c0_i32_0 : i32, i32
  }
  func.func @transform_13(%arg0: i32) -> (i32, i32, i32) {
    %c0_i32 = arith.constant 0 : i32
    %c0_i32_0 = arith.constant 0 : i32
    %c0_i32_1 = arith.constant 0 : i32
    return %arg0, %c0_i32, %c0_i32_0 : i32, i32, i32
  }
}

</mosaic_0001>

<bundles_post_ra>
// kernel: _lambda_.2
= control target key start
LH: loop header
LB: loop body
LE: loop exit
PB: predicated region body
PF: predicated region fallthrough
CT: control target
= control target key end

     0   :  { %s1659_s25 = smov 0   ;;  %s1857_s0 = inlined_call_operand.vmem [shape: f32[2,8,32], index: 0, kind: input, shape index: {}, may-alias: {0,13}]   ;;  %s1858_s1 = inlined_call_operand.vmem [shape: f32[1,32], index: 1, kind: input, shape index: {}]   ;;  %s1859_s2 = inlined_call_operand.vmem [shape: f32[1,32], index: 2, kind: input, shape index: {}]   ;;  %s1860_s3 = inlined_call_operand.vmem [shape: bf16[32,96], index: 3, kind: input, shape index: {}]   ;;  %s1861_s4 = inlined_call_operand.vmem [shape: f32[1,96], index: 4, kind: input, shape index: {}]   ;;  %s1862_s5 = inlined_call_operand.vmem [shape: bf16[32,32], index: 5, kind: input, shape index: {}]   ;;  %s1863_s6 = inlined_call_operand.vmem [shape: f32[1,32], index: 6, kind: input, shape index: {}]   ;;  %s1864_s7 = inlined_call_operand.vmem [shape: f32[1,32], index: 7, kind: input, shape index: {}]   ;;  %s1865_s8 = inlined_call_operand.vmem [shape: f32[1,32], index: 8, kind: input, shape index: {}]   ;;  %s1866_s9 = inlined_call_operand.vmem [shape: bf16[32,128], index: 9, kind: input, shape index: {}]   ;;  %s1867_s10 = inlined_call_operand.vmem [shape: f32[1,128], index: 10, kind: input, shape index: {}]   ;;  %s1868_s11 = inlined_call_operand.vmem [shape: bf16[128,32], index: 11, kind: input, shape index: {}]   ;;  %s1869_s12 = inlined_call_operand.vmem [shape: f32[1,32], index: 12, kind: input, shape index: {}]   ;;  %s1870_s13 = inlined_call_operand.vmem [shape: f32[2,8,32], index: 13, kind: output, shape index: {}, may-alias: {0,13}]  }
   0x1 LB: > { %s1349_s26 = sadd.s32 4294967295, %s1577_s25   ;;  %p1353_p0 = scmp.ge.s32.totalorder %s1577_s25, 1  ;;  %s1577_s25 = sphi %s1659_s25, %s23_s25  }
   0x2   : > { %p386_p1 = scmp.lt.s32.totalorder %s1577_s25, 3 }
   0x4   : > { %p387_p2 = pnand %p1353_p0, %p386_p1 }
   0x5   : > { %p428_p3 = scmp.lt.s32.totalorder (!%p387_p2), %s1349_s26, 1  ;;  %vm440_vm0 = vcmask (!%p387_p2), 261120   ;;  %v1535_v7 = vld [vmem:[%s1860_s3] sm:$0xff] (!%p387_p2)   ;;  %v1579_v8 = vmov (!%p387_p2), 0.0   ;;  %vm1580_vm1 = vmmov (!%p387_p2), 0   ;;  %v1536_v9 = vld [vmem:[%s1860_s3 + $0x8] sm:$0xff] (!%p387_p2)  }
   0x6   : > { %390 = sbr.rel (%p387_p2) target bundleno = 2637 (0xa4d), region = 72  ;;  %1425 = vmatprep.subr.bf16.mxu0 (!%p387_p2), %v1579_v8  ;;  %1429 = vmatprep.mubr.msk.bf16.mxu0 (!%p387_p2), %vm1580_vm1, %v1579_v8  ;;  %v1356_v14 = vld [vmem:[%s1858_s1] ss:$0 sm:$0xff] (!%p387_p2)  ;;  %s1581_s24 = smov (!%p387_p2), 104   ;;  %vm553_vm2 = vcmask (!%p387_p2), 64512   ;;  %vm808_vm3 = vcmask (!%p387_p2), 1043456  }
   0x7   : > { %1426 = vmatpush3.bf16.msra.mxu0 (!%p387_p2), %v1535_v7  ;;  %1445 = vmatprep.subr.bf16.mxu1 (!%p387_p2), %v1579_v8  ;;  %v1357_v16 = vld [vmem:[%s1859_s2] ss:$0 sm:$0xff] (!%p387_p2)  ;;  %s1582_s28 = smov (!%p387_p2), 120   ;;  %s1583_s29 = smov (!%p387_p2), 112   ;;  %vm1009_vm4 = vcmask (!%p387_p2), 130048   ;;  %vm1011_vm5 = vcmask (!%p387_p2), 195584  }
   0x8   : > { %1427 = vmatprep.subr.bf16.mxu0 (!%p387_p2), %v1579_v8  ;;  %1447 = vmatprep.mubr.msk.bf16.mxu1 (!%p387_p2), %vm1580_vm1, %v1579_v8  ;;  %v1358_v20 = vld [vmem:[%s1861_s4] ss:$0 sm:$0xff] (!%p387_p2)  ;;  %s1585_s14 = smov (!%p387_p2), 64   ;;  %s1586_s19 = smov (!%p387_p2), 8  }
   0x9   : > { %s1587_s20 = smov (!%p387_p2), 16   ;;  %s1588_s21 = smov (!%p387_p2), 24  }
   0xb   : > { %1428 = vmatpush3.bf16.msra.mxu0 (!%p387_p2), %v1536_v9 }
   0xc   : > { %1433 = vmatprep.subr.bf16.mxu0 (!%p387_p2), %v1579_v8 }
   0xd   : > { %s1872_s26 = smov (!%p428_p3, %s1349_s26), 1 }
   0xe   : > { %s1354_s27 = sshll.u32 %s1872_s26, 3 }
   0xf   : > { %s431_s30 = scalar_lea.vmem %s1857_s0, %s1354_s27 }
  0x10   : > { %v1675_v0 = vld [vmem:[%s431_s30] sm:$0xff]  ;;  %s1584_s30 = smov 96  }
  0x11   : > { %v441_v1 = vsel %vm440_vm0, %v1675_v0, 0.0 }
  0x12   : > { %442 = vadd.xlane.f32.xlu0 %v441_v1 }
  0x9f   : > { %v443_v2 = vpop.xlane.xlu0 %442 }
  0xa0   : > { %v445_v3 = vmul.f32 0.03125, %v443_v2 }
  0xa2   : > { %v446_v4 = vsub.f32 %v1675_v0, %v445_v3 }
  0xa4   : > { %v447_v5 = vmul.f32 %v446_v4, %v446_v4 }
  0xa6   : > { %v448_v6 = vsel %vm440_vm0, %v447_v5, 0.0 }
  0xa7   : > { %449 = vadd.xlane.f32.xlu0 %v448_v6 }
 0x134   : > { %v450_v10 = vpop.xlane.xlu0 %449 }
 0x135   : > { %v451_v11 = vmul.f32 0.03125, %v450_v10 }
 0x137   : > { %v452_v12 = vadd.f32 1e-05, %v451_v11 }
 0x139   : > { %1549 = vrsqrt.f32 %v452_v12 }
 0x143   : > { %v1550_v13 = vpop.eup %1549 }
 0x144   : > { %v454_v15 = vmul.f32 %v1550_v13, %v446_v4 }
 0x146   : > { %v461_v17 = vmul.f32 %v1356_v14, %v454_v15 }
 0x148   : > { %v468_v18 = vadd.f32 %v1357_v16, %v461_v17 }
 0x14a   : > { %v469_v19 = vpack.c.bf16 %v468_v18, %v468_v18 }
 0x14c   : > { %1430 = vmatmul.mubr.msk.bf16.vlgmr.msra.gmra.mrb[0].mxu0 %vm440_vm0, %v469_v19 }
 0x14d   : > { %1435 = vmatprep.mubr.msk.bf16.mxu0 %vm1580_vm1, %v1579_v8 }
 0x21f   : > { %v530_v21 = vpop.f32.mrb[0].mxu0 }
 0x220   : > { %v531_v22 = vadd.f32 %v1358_v20, %v530_v21  ;;  %v1431_v23 = vpop.f32.mrb[1].mxu0 }
 0x221   : > { %v533_v24 = vpop.f32.mrb[2].mxu0 }
 0x222   : > { %543 = vrot.lane.b32.xlu0 %v531_v22, %s1581_s24  ;;  %537 = vrot.lane.b32.xlu1 %v531_v22, %s1582_s28  ;;  %v1432_v25 = vpop.f32.mrb[3].mxu0  ;;  %v546_v26 = vpack.c.bf16 %v531_v22, %v531_v22 }
 0x226   : > { %540 = vrot.lane.b32.xlu1 %v531_v22, %s1583_s29  ;;  %s435_s29 = scalar_lea.vmem %s1870_s13, %s1354_s27 }
 0x22a   : > { %551 = vrot.lane.b32.xlu1 %v546_v26, %s1584_s30 }
 0x294   : > { %v538_v27 = vpop.permute.xlu1 %537  ;;  %v544_v31 = vpop.permute.xlu0 %543 }
 0x295   : > { %v1707_v28 = vpack.c.bf16 %v538_v27, %v538_v27  ;;  %v1713_v33 = vpack.c.bf16 %v544_v31, %v544_v31 }
 0x297   : > { %601 = vrot.lane.b32.xlu1 %v1707_v28, %s1584_s30 }
 0x298   : > { %v541_v29 = vpop.permute.xlu1 %540 }
 0x299   : > { %v1710_v30 = vpack.c.bf16 %v541_v29, %v541_v29 }
 0x29b   : > { %650 = vrot.lane.b32.xlu1 %v1710_v30, %s1584_s30 }
 0x29c   : > { %v552_v32 = vpop.permute.xlu1 %551 }
 0x29d   : > { %v558_v34 = vsel %vm553_vm2, %v552_v32, 0 }
 0x29e   : > { %1434 = vmatpush3.bf16.xpose.msra.mxu0 %v558_v34 }
 0x29f   : > { %699 = vrot.lane.b32.xlu1 %v1713_v33, %s1584_s30  ;;  %1439 = vmatprep.subr.bf16.mxu0 %v1579_v8 }
 0x2a5   : > { %1436 = vmatmul.mubr.msk.bf16.vlgmr.msra.gmra.mrb[4].mxu0 %vm553_vm2, %v546_v26 }
 0x2a6   : > { %1441 = vmatprep.mubr.msk.bf16.mxu0 %vm1580_vm1, %v1579_v8 }
 0x309   : > { %v602_v35 = vpop.permute.xlu1 %601 }
 0x30a   : > { %v607_v36 = vsel %vm553_vm2, %v602_v35, 0 }
 0x30b   : > { %1440 = vmatpush3.bf16.xpose.msra.mxu0 %v607_v36 }
 0x30c   : > { %1451 = vmatprep.subr.bf16.mxu0 %v1579_v8 }
 0x30d   : > { %v651_v37 = vpop.permute.xlu1 %650 }
 0x30e   : > { %v656_v38 = vsel %vm553_vm2, %v651_v37, 0 }
 0x30f   : > { %1446 = vmatpush3.bf16.xpose.msra.mxu1 %v656_v38 }
 0x310   : > { %1457 = vmatprep.subr.bf16.mxu1 %v1579_v8 }
 0x311   : > { %v700_v39 = vpop.permute.xlu1 %699 }
 0x312   : > { %v705_v40 = vsel %vm553_vm2, %v700_v39, 0  ;;  %1442 = vmatmul.mubr.msk.bf16.vlgmr.msra.gmra.mrb[8].mxu0 %vm553_vm2, %v1707_v28 }
 0x313   : > { %1452 = vmatpush3.bf16.xpose.msra.mxu0 %v705_v40  ;;  %1453 = vmatprep.mubr.msk.bf16.mxu0 %vm1580_vm1, %v1579_v8 }
 0x314   : > { %1463 = vmatprep.subr.bf16.mxu0 %v1579_v8 }
 0x316   : > { %1448 = vmatmul.mubr.msk.bf16.vlgmr.msra.gmra.mrb[0].mxu1 %vm553_vm2, %v1710_v30 }
 0x317   : > { %1459 = vmatprep.mubr.msk.bf16.mxu1 %vm1580_vm1, %v1579_v8 }
 0x31a   : > { %1454 = vmatmul.mubr.msk.bf16.vlgmr.msra.gmra.mrb[12].mxu0 %vm553_vm2, %v1713_v33 }
 0x31b   : > { %1465 = vmatprep.mubr.msk.bf16.mxu0 %vm1580_vm1, %v1579_v8 }
 0x378   : > { %v594_v41 = vpop.f32.mrb[4].mxu0 }
 0x379   : > { %v1437_v42 = vpop.f32.mrb[5].mxu0  ;;  %v747_v43 = vsel %vm553_vm2, %v594_v41, -inf }
 0x37a   : > { %748 = vmax.xlane.f32.xlu1 %v747_v43  ;;  %v597_v44 = vpop.f32.mrb[6].mxu0 }
 0x37b   : > { %v1438_v45 = vpop.f32.mrb[7].mxu0 }
 0x3e5   : > { %v643_v46 = vpop.f32.mrb[8].mxu0 }
 0x3e6   : > { %v1443_v47 = vpop.f32.mrb[9].mxu0  ;;  %v750_v48 = vsel %vm553_vm2, %v643_v46, -inf }
 0x3e7   : > { %751 = vmax.xlane.f32.xlu0 %v750_v48  ;;  %v646_v49 = vpop.f32.mrb[10].mxu0 }
 0x3e8   : > { %v1444_v50 = vpop.f32.mrb[11].mxu0 }
 0x3e9   : > { %v692_v51 = vpop.f32.mrb[0].mxu1 }
 0x3ea   : > { %v1449_v52 = vpop.f32.mrb[1].mxu1  ;;  %v753_v53 = vsel %vm553_vm2, %v692_v51, -inf }
 0x3eb   : > { %v695_v54 = vpop.f32.mrb[2].mxu1  ;;  %754 = vmax.xlane.f32.xlu1 %v753_v53 }
 0x3ec   : > { %v1450_v55 = vpop.f32.mrb[3].mxu1 }
 0x3ed   : > { %v741_v56 = vpop.f32.mrb[12].mxu0  ;;  %v1537_v55 = vld [vmem:[%s1862_s5] sm:$0xff]  }
 0x3ee   : > { %v1455_v57 = vpop.f32.mrb[13].mxu0  ;;  %v756_v58 = vsel %vm553_vm2, %v741_v56, -inf }
 0x3ef   : > { %757 = vmax.xlane.f32.xlu0 %v756_v58  ;;  %v744_v59 = vpop.f32.mrb[14].mxu0 }
 0x3f0   : > { %v1456_v60 = vpop.f32.mrb[15].mxu0 }
 0x3fc   : > { %803 = vrot.lane.b32.xlu1 %v546_v26, %s1585_s14 }
 0x407   : > { %v749_v61 = vpop.xlane.xlu1 %748 }
 0x408   : > { %v759_v62 = vmax.f32 %v749_v61, -1e+30 }
 0x40a   : > { %v763_v63 = vsub.f32 %v594_v41, %v759_v62 }
 0x40c   : > { %v767_v1 = vmul.f32 1.442695, %v763_v63 }
 0x40e   : > { %1551 = vpow2.f32 %v767_v1 }
 0x418   : > { %v1552_v2 = vpop.eup %1551 }
 0x419   : > { %v775_v3 = vsel %vm553_vm2, %v1552_v2, 0.0 }
 0x420   : > { %776 = vadd.xlane.f32.xlu1 %v775_v3 }
 0x474   : > { %v752_v4 = vpop.xlane.xlu0 %751 }
 0x475   : > { %v760_v5 = vmax.f32 %v752_v4, -1e+30 }
 0x477   : > { %v764_v6 = vsub.f32 %v643_v46, %v760_v5 }
 0x478   : > { %v755_v7 = vpop.xlane.xlu1 %754 }
 0x479   : > { %v769_v9 = vmul.f32 1.442695, %v764_v6  ;;  %v761_v10 = vmax.f32 %v755_v7, -1e+30 }
 0x47b   : > { %1553 = vpow2.f32 %v769_v9  ;;  %v765_v11 = vsub.f32 %v692_v51, %v761_v10 }
 0x47c   : > { %v804_v12 = vpop.permute.xlu1 %803  ;;  %v758_v13 = vpop.xlane.xlu0 %757 }
 0x47d   : > { %v771_v14 = vmul.f32 1.442695, %v765_v11  ;;  %v810_v15 = vsel %vm808_vm3, %v804_v12, 0  ;;  %v762_v16 = vmax.f32 %v758_v13, -1e+30 }
 0x47e   : > { %1458 = vmatpush3.bf16.msra.mxu1 %v810_v15 }
 0x47f   : > { %1555 = vpow2.f32 %v771_v14  ;;  %v766_v17 = vsub.f32 %v741_v56, %v762_v16  ;;  %1469 = vmatprep.subr.bf16.mxu1 %v1579_v8  ;;  %v1538_v56 = vld [vmem:[%s1862_s5 + $0x8] sm:$0xff]   ;;  %v1370_v14 = vld [vmem:[%s1863_s6] ss:$0 sm:$0xff] }
 0x481   : > { %v773_v18 = vmul.f32 1.442695, %v766_v17 }
 0x483   : > { %1557 = vpow2.f32 %v773_v18 }
 0x485   : > { %v1554_v19 = vpop.eup %1553 }
 0x486   : > { %v778_v20 = vsel %vm553_vm2, %v1554_v19, 0.0 }
 0x487   : > { %779 = vadd.xlane.f32.xlu0 %v778_v20 }
 0x489   : > { %v1556_v21 = vpop.eup %1555 }
 0x48a   : > { %v781_v22 = vsel %vm553_vm2, %v1556_v21, 0.0 }
 0x48b   : > { %782 = vadd.xlane.f32.xlu1 %v781_v22 }
 0x48d   : > { %v1558_v23 = vpop.eup %1557 }
 0x48e   : > { %v784_v24 = vsel %vm553_vm2, %v1558_v23, 0.0 }
 0x48f   : > { %785 = vadd.xlane.f32.xlu0 %v784_v24 }
 0x49c   : > { %900 = vrot.lane.b32.xlu1 %v1710_v30, %s1585_s14 }
 0x4a0   : > { %948 = vrot.lane.b32.xlu1 %v1713_v33, %s1585_s14 }
 0x4a5   : > { %852 = vrot.lane.b32.xlu0 %v1707_v28, %s1585_s14 }
 0x4ad   : > { %v777_v25 = vpop.xlane.xlu1 %776 }
 0x4ae   : > { %v787_v26 = vmax.f32 %v777_v25, 1e-30 }
 0x4b0   : > { %1559 = vrcp.f32 %v787_v26 }
 0x4ba   : > { %v1560_v27 = vpop.eup %1559 }
 0x4bb   : > { %v795_v29 = vmul.f32 %v1560_v27, %v1552_v2  ;;  %v1539_v27 = vld [vmem:[%s1866_s9] sm:$0xff]  }
 0x4bd   : > { %v799_v31 = vpack.c.bf16 %v795_v29, %v795_v29  ;;  %v1541_v29 = vld [vmem:[%s1868_s11] sm:$0xff]  }
 0x4bf   : > { %1460 = vmatmul.mubr.msk.bf16.vlgmr.msra.gmra.mrb[4].mxu1 %vm553_vm2, %v799_v31  ;;  %v1542_v31 = vld [vmem:[%s1868_s11 + $0x8] sm:$0xff]  }
 0x4c0   : > { %1471 = vmatprep.mubr.msk.bf16.mxu1 %vm1580_vm1, %v1579_v8 }
 0x514   : > { %v780_v32 = vpop.xlane.xlu0 %779 }
 0x515   : > { %v788_v34 = vmax.f32 %v780_v32, 1e-30  ;;  %v1543_v32 = vld [vmem:[%s1868_s11 + $0x10] sm:$0xff]  }
 0x517   : > { %1561 = vrcp.f32 %v788_v34 }
 0x518   : > { %v783_v30 = vpop.xlane.xlu1 %782 }
 0x519   : > { %v789_v35 = vmax.f32 %v783_v30, 1e-30 }
 0x51b   : > { %1563 = vrcp.f32 %v789_v35 }
 0x51c   : > { %v901_v33 = vpop.permute.xlu1 %900  ;;  %v786_v36 = vpop.xlane.xlu0 %785 }
 0x51d   : > { %v906_v28 = vsel %vm808_vm3, %v901_v33, 0  ;;  %v790_v37 = vmax.f32 %v786_v36, 1e-30  ;;  %v1374_v36 = vld [vmem:[%s1864_s7] ss:$0 sm:$0xff] }
 0x51e   : > { %1470 = vmatpush3.bf16.msra.mxu1 %v906_v28 }
 0x51f   : > { %1565 = vrcp.f32 %v790_v37  ;;  %1481 = vmatprep.subr.bf16.mxu1 %v1579_v8  ;;  %v1375_v37 = vld [vmem:[%s1865_s8] ss:$0 sm:$0xff] }
 0x520   : > { %v853_v38 = vpop.permute.xlu0 %852  ;;  %v949_v42 = vpop.permute.xlu1 %948 }
 0x521   : > { %v1562_v39 = vpop.eup %1561  ;;  %v858_v40 = vsel %vm808_vm3, %v853_v38, 0  ;;  %v954_v46 = vsel %vm808_vm3, %v949_v42, 0  ;;  %v1545_v42 = vld [vmem:[%s1868_s11 + $0x20] sm:$0xff]  }
 0x522   : > { %v796_v41 = vmul.f32 %v1562_v39, %v1554_v19  ;;  %1464 = vmatpush3.bf16.msra.mxu0 %v858_v40 }
 0x523   : > { %1475 = vmatprep.subr.bf16.mxu0 %v1579_v8 }
 0x524   : > { %v800_v43 = vpack.c.bf16 %v796_v41, %v796_v41  ;;  %v1544_v41 = vld [vmem:[%s1868_s11 + $0x18] sm:$0xff]  }
 0x525   : > { %v1564_v44 = vpop.eup %1563 }
 0x526   : > { %v797_v45 = vmul.f32 %v1564_v44, %v1556_v21  ;;  %1466 = vmatmul.mubr.msk.bf16.vlgmr.msra.gmra.mrb[16].mxu0 %vm553_vm2, %v800_v43  ;;  %v1546_v43 = vld [vmem:[%s1868_s11 + $0x28] sm:$0xff]   ;;  %v1547_v44 = vld [vmem:[%s1868_s11 + $0x30] sm:$0xff]  }
 0x527   : > { %1476 = vmatpush3.bf16.msra.mxu0 %v954_v46  ;;  %1477 = vmatprep.mubr.msk.bf16.mxu0 %vm1580_vm1, %v1579_v8  ;;  %v1376_v46 = vld [vmem:[%s1867_s10] ss:$0 sm:$0xff] }
 0x528   : > { %v801_v47 = vpack.c.bf16 %v797_v45, %v797_v45  ;;  %1489 = vmatprep.subr.bf16.mxu0 %v1579_v8  ;;  %v1548_v45 = vld [vmem:[%s1868_s11 + $0x38] sm:$0xff]  }
 0x529   : > { %v1566_v48 = vpop.eup %1565 }
 0x52a   : > { %v798_v49 = vmul.f32 %v1566_v48, %v1558_v23  ;;  %1472 = vmatmul.mubr.msk.bf16.vlgmr.msra.gmra.mrb[8].mxu1 %vm553_vm2, %v801_v47 }
 0x52b   : > { %1485 = vmatprep.mubr.msk.bf16.mxu1 %vm1580_vm1, %v1579_v8  ;;  %1482 = vmatpush3.bf16.msra.mxu1 %v1537_v55 }
 0x52c   : > { %v802_v50 = vpack.c.bf16 %v798_v49, %v798_v49  ;;  %1483 = vmatprep.subr.bf16.mxu1 %v1579_v8 }
 0x52e   : > { %1478 = vmatmul.mubr.msk.bf16.vlgmr.msra.gmra.mrb[20].mxu0 %vm553_vm2, %v802_v50 }
 0x52f   : > { %1493 = vmatprep.mubr.msk.bf16.mxu0 %vm1580_vm1, %v1579_v8  ;;  %1484 = vmatpush3.bf16.msra.mxu1 %v1538_v56 }
 0x530   : > { %1497 = vmatprep.subr.bf16.mxu1 %v1579_v8  ;;  %1490 = vmatpush3.bf16.msra.mxu0 %v1539_v27 }
 0x531   : > { %1491 = vmatprep.subr.bf16.mxu0 %v1579_v8 }
 0x592   : > { %v846_v51 = vpop.f32.mrb[4].mxu1 }
 0x593   : > { %v1461_v52 = vpop.f32.mrb[5].mxu1 }
 0x594   : > { %v849_v53 = vpop.f32.mrb[6].mxu1 }
 0x595   : > { %v1462_v54 = vpop.f32.mrb[7].mxu1 }
 0x5f9   : > { %v894_v57 = vpop.f32.mrb[16].mxu0 }
 0x5fa   : > { %997 = vrot.lane.b32.xlu0 %v894_v57, %s1586_s19  ;;  %v1467_v58 = vpop.f32.mrb[17].mxu0  ;;  %v1380_v57 = vld [vmem:[%s1869_s12] ss:$0 sm:$0xff] }
 0x5fb   : > { %v897_v59 = vpop.f32.mrb[18].mxu0 }
 0x5fc   : > { %v1468_v60 = vpop.f32.mrb[19].mxu0 }
 0x5fd   : > { %v942_v61 = vpop.f32.mrb[8].mxu1 }
 0x5fe   : > { %1001 = vrot.lane.b32.xlu1 %v942_v61, %s1587_s20  ;;  %v1473_v62 = vpop.f32.mrb[9].mxu1 }
 0x5ff   : > { %v945_v63 = vpop.f32.mrb[10].mxu1 }
 0x600   : > { %v1474_v1 = vpop.f32.mrb[11].mxu1 }
 0x601   : > { %v990_v2 = vpop.f32.mrb[20].mxu0 }
 0x602   : > { %1005 = vrot.lane.b32.xlu0 %v990_v2, %s1588_s21  ;;  %v1479_v3 = vpop.f32.mrb[21].mxu0 }
 0x603   : > { %v993_v4 = vpop.f32.mrb[22].mxu0 }
 0x604   : > { %v1480_v5 = vpop.f32.mrb[23].mxu0 }
 0x66c   : > { %v998_v6 = vpop.permute.xlu0 %997 }
 0x66d   : > { %v1008_v9 = vsel %vm553_vm2, %v846_v51, %v998_v6 }
 0x670   : > { %v1002_v7 = vpop.permute.xlu1 %1001 }
 0x671   : > { %v1010_v10 = vsel %vm1009_vm4, %v1008_v9, %v1002_v7 }
 0x674   : > { %v1006_v11 = vpop.permute.xlu0 %1005 }
 0x675   : > { %v1012_v12 = vsel %vm1011_vm5, %v1010_v10, %v1006_v11 }
 0x676   : > { %v1013_v13 = vpack.c.bf16 %v1012_v12, %v1012_v12 }
 0x678   : > { %1486 = vmatmul.mubr.msk.bf16.vlgmr.msra.gmra.mrb[12].mxu1 %vm440_vm0, %v1013_v13 }
 0x679   : > { %1513 = vmatprep.mubr.msk.bf16.mxu1 %vm1580_vm1, %v1579_v8  ;;  %1498 = vmatpush3.bf16.msra.mxu1 %v1541_v29 }
 0x67a   : > { %1499 = vmatprep.subr.bf16.mxu1 %v1579_v8 }
 0x67d   : > { %1500 = vmatpush3.bf16.msra.mxu1 %v1542_v31 }
 0x67e   : > { %1501 = vmatprep.subr.bf16.mxu1 %v1579_v8 }
 0x681   : > { %1502 = vmatpush3.bf16.msra.mxu1 %v1543_v32 }
 0x682   : > { %1503 = vmatprep.subr.bf16.mxu1 %v1579_v8 }
 0x685   : > { %1504 = vmatpush3.bf16.msra.mxu1 %v1544_v41 }
 0x686   : > { %1505 = vmatprep.subr.bf16.mxu1 %v1579_v8 }
 0x689   : > { %1506 = vmatpush3.bf16.msra.mxu1 %v1545_v42 }
 0x68a   : > { %1507 = vmatprep.subr.bf16.mxu1 %v1579_v8 }
 0x68d   : > { %1508 = vmatpush3.bf16.msra.mxu1 %v1546_v43 }
 0x68e   : > { %1509 = vmatprep.subr.bf16.mxu1 %v1579_v8 }
 0x691   : > { %1510 = vmatpush3.bf16.msra.mxu1 %v1547_v44 }
 0x692   : > { %1511 = vmatprep.subr.bf16.mxu1 %v1579_v8 }
 0x695   : > { %1512 = vmatpush3.bf16.msra.mxu1 %v1548_v45 }
 0x74b   : > { %v1074_v15 = vpop.f32.mrb[12].mxu1 }
 0x74c   : > { %v1075_v16 = vadd.f32 %v1370_v14, %v1074_v15  ;;  %v1487_v17 = vpop.f32.mrb[13].mxu1 }
 0x74d   : > { %v1077_v18 = vpop.f32.mrb[14].mxu1 }
 0x74e   : > { %v1790_v19 = vadd.f32 %v1075_v16, %v1675_v0  ;;  %v1488_v20 = vpop.f32.mrb[15].mxu1  ;;  %v1540_v0 = vld [vmem:[%s1866_s9 + $0x8] sm:$0xff]  }
 0x74f   : > { %1492 = vmatpush3.bf16.msra.mxu0 %v1540_v0 }
 0x750   : > { %v1083_v21 = vsel %vm440_vm0, %v1790_v19, 0.0 }
 0x751   : > { %1084 = vadd.xlane.f32.xlu1 %v1083_v21 }
 0x7de   : > { %v1085_v22 = vpop.xlane.xlu1 %1084 }
 0x7df   : > { %v1086_v23 = vmul.f32 0.03125, %v1085_v22 }
 0x7e1   : > { %v1087_v24 = vsub.f32 %v1790_v19, %v1086_v23 }
 0x7e3   : > { %v1088_v25 = vmul.f32 %v1087_v24, %v1087_v24 }
 0x7e5   : > { %v1089_v26 = vsel %vm440_vm0, %v1088_v25, 0.0 }
 0x7e6   : > { %1090 = vadd.xlane.f32.xlu0 %v1089_v26 }
 0x873   : > { %v1091_v34 = vpop.xlane.xlu0 %1090 }
 0x874   : > { %v1092_v30 = vmul.f32 0.03125, %v1091_v34 }
 0x876   : > { %v1093_v35 = vadd.f32 1e-05, %v1092_v30 }
 0x878   : > { %1567 = vrsqrt.f32 %v1093_v35 }
 0x882   : > { %v1568_v33 = vpop.eup %1567 }
 0x883   : > { %v1095_v28 = vmul.f32 %v1568_v33, %v1087_v24 }
 0x885   : > { %v1102_v38 = vmul.f32 %v1374_v36, %v1095_v28 }
 0x887   : > { %v1109_v39 = vadd.f32 %v1375_v37, %v1102_v38 }
 0x889   : > { %v1110_v40 = vpack.c.bf16 %v1109_v39, %v1109_v39 }
 0x88b   : > { %1494 = vmatmul.mubr.msk.bf16.vlgmr.msra.gmra.mrb[24].mxu0 %vm440_vm0, %v1110_v40 }
 0x95e   : > { %v1171_v47 = vpop.f32.mrb[24].mxu0 }
 0x95f   : > { %v1172_v48 = vadd.f32 %v1376_v46, %v1171_v47  ;;  %v1495_v49 = vpop.f32.mrb[25].mxu0 }
 0x960   : > { %v1174_v50 = vpop.f32.mrb[26].mxu0 }
 0x961   : > { %v1178_v51 = vmul.f32 0.70710677, %v1172_v48  ;;  %v1496_v52 = vpop.f32.mrb[27].mxu0  ;;  %v1177_v54 = vmul.f32 0.5, %v1172_v48 }
 0x963   : > { %1569 = verf.f32 %v1178_v51 }
 0x96d   : > { %v1570_v53 = vpop.eup %1569 }
 0x96e   : > { %v1180_v8 = vadd.f32 1.0, %v1570_v53 }
 0x970   : > { %v1181_v55 = vmul.f32 %v1180_v8, %v1177_v54 }
 0x972   : > { %v1182_v56 = vpack.c.bf16 %v1181_v55, %v1181_v55 }
 0x974   : > { %1514 = vmatmul.mubr.bf16.vlgmr.msra.gmra.mrb[16].mxu1 %v1182_v56 }
 0xa47   : > { %v1288_v58 = vpop.f32.mrb[16].mxu1 }
 0xa48   : > { %v1289_v59 = vadd.f32 %v1380_v57, %v1288_v58  ;;  %v1515_v60 = vpop.f32.mrb[17].mxu1 }
 0xa49   : > { %v1291_v61 = vpop.f32.mrb[18].mxu1 }
 0xa4a   : > { %v1294_v62 = vadd.f32 %v1289_v59, %v1790_v19  ;;  %v1516_v63 = vpop.f32.mrb[19].mxu1 }
 0xa4c   : > { %1295 = vst.msk [vmem:[%s435_s29] sm:$0xff] %vm440_vm0, %v1294_v62 }
 0xa4d PF: > { %s23_s25 = sadd.s32 1, %s1577_s25  }
 0xa4e   : > { %p20_p4 = scmp.ge.s32.totalorder %s23_s25, 4  }
 0xa50   :  { %22 = sbr.rel (!%p20_p4) target bundleno = 1 (0x1), region = 102 }

</bundles_post_ra>
